<compile_context>
chip_gen: v6e
topology: v6e:2x2x1
jax: 0.10.0
libtpu: 0.0.40
codegen_flags: <defaults>
</compile_context>

<pallas_src>
import functools

import jax
import jax.numpy as jnp
from jax.experimental import pallas as pl
from jax.experimental.pallas import tpu as pltpu


def _round_up(n: int, m: int) -> int:
    return ((n + m - 1) // m) * m


def _diffusion_fwd_kernel(x_ref, noise_ref, coef_ref, hbias_ref,   # (TB,Fp) (TB,Fp) (TB,2) (TB,Hp)
                          w1_ref, w2_ref, b2_ref,                  # (Fp,Hp) bf16, (Hp,Fp) bf16, (1,Fp) f32
                          out_ref):                                # (TB,Fp) f32
    # ---- q_sample: f32 elementwise on the VPU ----
    coef = coef_ref[...]
    ca = coef[:, 0:1]                  # sqrt_alphas_cumprod[t]
    cs = coef[:, 1:2]                  # sqrt_one_minus_alphas_cumprod[t]
    x_noisy = ca * x_ref[...] + cs * noise_ref[...]

    # ---- denoise_fn: 2-layer MLP; bf16 operands -> MXU, f32 accumulation ----
    h = jnp.dot(x_noisy.astype(jnp.bfloat16), w1_ref[...],
                preferred_element_type=jnp.float32)
    h = jnp.maximum(h + hbias_ref[...], 0.0)      # hbias = time-embedding + b1 (folded)
    out = jnp.dot(h.astype(jnp.bfloat16), w2_ref[...],
                  preferred_element_type=jnp.float32) + b2_ref[...]
    out_ref[...] = out


class GaussianMultinomialDiffusionPallas:
    """JAX / Pallas port of GaussianMultinomialDiffusion (forward pass only).

    denoise_fn (an arbitrary nn.Module in the reference) is realized as a
    deterministic 2-layer MLP with a learned per-timestep embedding table.
    """

    def __init__(self, num_numerical_features, num_timesteps, hidden=32,
                 key=jax.random.PRNGKey(0)):
        self.num_numerical_features = num_numerical_features
        self.num_timesteps = num_timesteps
        self.hidden = hidden

        F, H = num_numerical_features, hidden
        self.f_pad = _round_up(max(F, 1), 128)   # lane-dense feature axis
        self.h_pad = _round_up(max(H, 1), 128)   # lane-dense hidden axis

        # Diffusion schedule (same as the PyTorch __init__).
        self.betas = jnp.linspace(1e-4, 0.02, num_timesteps, dtype=jnp.float32)
        alphas_cumprod = jnp.cumprod(1.0 - self.betas)
        self.sqrt_alphas_cumprod = jnp.sqrt(alphas_cumprod)
        self.sqrt_one_minus_alphas_cumprod = jnp.sqrt(1.0 - alphas_cumprod)
        # One gather table for both q_sample coefficients.
        self.coef_table = jnp.stack(
            [self.sqrt_alphas_cumprod, self.sqrt_one_minus_alphas_cumprod], axis=-1)

        # Deterministic denoiser parameters (padded to lane-dense shapes).
        k1, k2, k3 = jax.random.split(key, 3)
        w1 = jax.random.normal(k1, (F, H), jnp.float32) * 0.1
        w2 = jax.random.normal(k2, (H, F), jnp.float32) * 0.1
        b1 = jnp.zeros((H,), jnp.float32)
        temb = jax.random.normal(k3, (num_timesteps, H), jnp.float32) * 0.1

        self.w1 = jnp.pad(w1, ((0, self.f_pad - F), (0, self.h_pad - H))).astype(jnp.bfloat16)
        self.w2 = jnp.pad(w2, ((0, self.h_pad - H), (0, self.f_pad - F))).astype(jnp.bfloat16)
        self.b2 = jnp.zeros((1, self.f_pad), jnp.float32)
        # Fold b1 into the time-embedding table (drops one VPU add + one input ref).
        self.hbias_table = jnp.pad(temb + b1[None, :], ((0, 0), (0, self.h_pad - H)))

        # TODO(synk): sample() / reverse_diffusion_step() (the reverse loop) are not
        # part of forward() and are not implemented here.

    @functools.partial(jax.jit, static_argnums=0)
    def _forward_impl(self, x, t, noise):
        B, F = x.shape
        f_pad, h_pad = self.f_pad, self.h_pad
        tile_b = min(256, _round_up(B, 8))
        b_pad = _round_up(B, tile_b)
        n_tiles = b_pad // tile_b

        # Tiny glue: pad to lane/sublane-dense shapes + per-timestep gathers.
        xp = jnp.pad(x.astype(jnp.float32), ((0, b_pad - B), (0, f_pad - F)))
        np_ = jnp.pad(noise.astype(jnp.float32), ((0, b_pad - B), (0, f_pad - F)))
        coef = jnp.pad(jnp.take(self.coef_table, t, axis=0), ((0, b_pad - B), (0, 0)))
        hbias = jnp.pad(jnp.take(self.hbias_table, t, axis=0), ((0, b_pad - B), (0, 0)))

        flops = 4 * b_pad * f_pad * h_pad                        # two matmuls
        bytes_accessed = (xp.nbytes + np_.nbytes + coef.nbytes + hbias.nbytes
                          + self.w1.nbytes + self.w2.nbytes + self.b2.nbytes
                          + b_pad * f_pad * 4)

        out_pad = pl.pallas_call(
            _diffusion_fwd_kernel,
            grid=(n_tiles,),
            in_specs=[
                pl.BlockSpec((tile_b, f_pad), lambda i: (i, 0)),   # x
                pl.BlockSpec((tile_b, f_pad), lambda i: (i, 0)),   # noise
                pl.BlockSpec((tile_b, 2),     lambda i: (i, 0)),   # (ca, cs)
                pl.BlockSpec((tile_b, h_pad), lambda i: (i, 0)),   # time-emb + b1
                pl.BlockSpec((f_pad, h_pad),  lambda i: (0, 0)),   # w1 (VMEM-resident)
                pl.BlockSpec((h_pad, f_pad),  lambda i: (0, 0)),   # w2 (VMEM-resident)
                pl.BlockSpec((1, f_pad),      lambda i: (0, 0)),   # b2 (VMEM-resident)
            ],
            out_specs=pl.BlockSpec((tile_b, f_pad), lambda i: (i, 0)),
            out_shape=jax.ShapeDtypeStruct((b_pad, f_pad), jnp.float32),
            compiler_params=pltpu.CompilerParams(
                dimension_semantics=("parallel",),
                vmem_limit_bytes=32 * 1024 * 1024),
            cost_estimate=pl.CostEstimate(flops=flops,
                                          transcendentals=0,
                                          bytes_accessed=bytes_accessed),
        )(xp, np_, coef, hbias, self.w1, self.w2, self.b2)

        return out_pad[:B, :F]

    def forward(self, x, t, key=jax.random.PRNGKey(0)):
        """x: (B, F) float32, t: (B,) int32. Returns (model_out, noise)."""
        noise = jax.random.normal(key, x.shape, jnp.float32)
        model_out = self._forward_impl(x, t, noise)
        return model_out, noise

    # Pure-JAX reference for the kernel math (same noise, same bf16 casts).
    def forward_ref_with_noise(self, x, t, noise):
        B, F = x.shape
        ca = jnp.take(self.sqrt_alphas_cumprod, t)[:, None]
        cs = jnp.take(self.sqrt_one_minus_alphas_cumprod, t)[:, None]
        x_noisy = ca * x + cs * noise
        xp = jnp.pad(x_noisy, ((0, 0), (0, self.f_pad - F)))
        h = jnp.dot(xp.astype(jnp.bfloat16), self.w1,
                    preferred_element_type=jnp.float32)
        h = jnp.maximum(h + jnp.take(self.hbias_table, t, axis=0), 0.0)
        out = jnp.dot(h.astype(jnp.bfloat16), self.w2,
                      preferred_element_type=jnp.float32) + self.b2
        return out[:, :F]


if __name__ == "__main__":
    B, F, H, T = 8, 16, 32, 100

    key = jax.random.PRNGKey(0)
    k_param, k_x, k_t, k_noise = jax.random.split(key, 4)

    model = GaussianMultinomialDiffusionPallas(
        num_numerical_features=F, num_timesteps=T, hidden=H, key=k_param)

    x = jax.random.normal(k_x, (B, F), jnp.float32)
    t = jax.random.randint(k_t, (B,), 0, T, jnp.int32)

    model_out, noise = model.forward(x, t, key=k_noise)
    model_out = jax.block_until_ready(model_out)
    noise = jax.block_until_ready(noise)

    assert model_out.shape == (B, F) and noise.shape == (B, F)
    assert bool(jnp.all(jnp.isfinite(model_out)))
    assert bool(jnp.all(jnp.isfinite(noise)))

    ref_out = model.forward_ref_with_noise(x, t, noise)
    assert jnp.allclose(model_out, ref_out, atol=1e-4, rtol=1e-4), (
        float(jnp.max(jnp.abs(model_out - ref_out))))

    print("KERNEL_OK")
</pallas_src>

<mosaic_0001>
module attributes {stable_mosaic.version = 11 : i64} {
  func.func @_diffusion_fwd_kernel(%arg0: i32, %arg1: memref<8x128xf32, #tpu.memory_space<vmem>>, %arg2: memref<8x128xf32, #tpu.memory_space<vmem>>, %arg3: memref<8x2xf32, #tpu.memory_space<vmem>>, %arg4: memref<8x128xf32, #tpu.memory_space<vmem>>, %arg5: memref<128x128xbf16, #tpu.memory_space<vmem>>, %arg6: memref<128x128xbf16, #tpu.memory_space<vmem>>, %arg7: memref<1x128xf32, #tpu.memory_space<vmem>>, %arg8: memref<8x128xf32, #tpu.memory_space<vmem>>) attributes {dimension_semantics = [#tpu.dimension_semantics<parallel>], iteration_bounds = array<i64: 1>, scalar_prefetch = 0 : i64, scratch_operands = 0 : i64, tpu.core_type = #tpu.core_type<tc>, window_params = [{transform_indices = @transform_0, window_bounds = array<i64: 8, 128>}, {transform_indices = @transform_1, window_bounds = array<i64: 8, 128>}, {transform_indices = @transform_2, window_bounds = array<i64: 8, 2>}, {transform_indices = @transform_3, window_bounds = array<i64: 8, 128>}, {pipeline_mode = #tpu.pipeline_mode<synchronous>, transform_indices = @transform_4, window_bounds = array<i64: 128, 128>}, {pipeline_mode = #tpu.pipeline_mode<synchronous>, transform_indices = @transform_5, window_bounds = array<i64: 128, 128>}, {pipeline_mode = #tpu.pipeline_mode<synchronous>, transform_indices = @transform_6, window_bounds = array<i64: 1, 128>}, {transform_indices = @transform_7, window_bounds = array<i64: 8, 128>}]} {
    %c0 = arith.constant 0 : index
    %c0_0 = arith.constant 0 : index
    %0 = vector.load %arg3[%c0, %c0_0] : memref<8x2xf32, #tpu.memory_space<vmem>>, vector<8x2xf32>
    %1 = vector.extract_strided_slice %0 {offsets = [0, 0], sizes = [8, 1], strides = [1, 1]} : vector<8x2xf32> to vector<8x1xf32>
    %2 = vector.extract_strided_slice %0 {offsets = [0, 1], sizes = [8, 1], strides = [1, 1]} : vector<8x2xf32> to vector<8x1xf32>
    %c0_1 = arith.constant 0 : index
    %c0_2 = arith.constant 0 : index
    %3 = vector.load %arg1[%c0_1, %c0_2] : memref<8x128xf32, #tpu.memory_space<vmem>>, vector<8x128xf32>
    %4 = vector.broadcast %1 : vector<8x1xf32> to vector<8x128xf32>
    %5 = arith.mulf %4, %3 : vector<8x128xf32>
    %c0_3 = arith.constant 0 : index
    %c0_4 = arith.constant 0 : index
    %6 = vector.load %arg2[%c0_3, %c0_4] : memref<8x128xf32, #tpu.memory_space<vmem>>, vector<8x128xf32>
    %7 = vector.broadcast %2 : vector<8x1xf32> to vector<8x128xf32>
    %8 = arith.mulf %7, %6 : vector<8x128xf32>
    %9 = arith.addf %5, %8 : vector<8x128xf32>
    %10 = arith.truncf %9 : vector<8x128xf32> to vector<8x128xbf16>
    %c0_5 = arith.constant 0 : index
    %c0_6 = arith.constant 0 : index
    %11 = vector.load %arg5[%c0_5, %c0_6] : memref<128x128xbf16, #tpu.memory_space<vmem>>, vector<128x128xbf16>
    %cst = arith.constant dense<0.000000e+00> : vector<8x128xf32>
    %12 = tpu.matmul %10, %11, %cst {dimension_numbers = #tpu.dot_dimension_numbers<[1], [0], [0], [1], [0, 0, 1, 1], [], []>} : vector<8x128xbf16>, vector<128x128xbf16>, vector<8x128xf32> -> vector<8x128xf32>
    %c0_7 = arith.constant 0 : index
    %c0_8 = arith.constant 0 : index
    %13 = vector.load %arg4[%c0_7, %c0_8] : memref<8x128xf32, #tpu.memory_space<vmem>>, vector<8x128xf32>
    %14 = arith.addf %12, %13 : vector<8x128xf32>
    %cst_9 = arith.constant 0.000000e+00 : f32
    %15 = vector.broadcast %cst_9 : f32 to vector<8x128xf32>
    %16 = arith.maximumf %14, %15 : vector<8x128xf32>
    %17 = arith.truncf %16 : vector<8x128xf32> to vector<8x128xbf16>
    %c0_10 = arith.constant 0 : index
    %c0_11 = arith.constant 0 : index
    %18 = vector.load %arg6[%c0_10, %c0_11] : memref<128x128xbf16, #tpu.memory_space<vmem>>, vector<128x128xbf16>
    %cst_12 = arith.constant dense<0.000000e+00> : vector<8x128xf32>
    %19 = tpu.matmul %17, %18, %cst_12 {dimension_numbers = #tpu.dot_dimension_numbers<[1], [0], [0], [1], [0, 0, 1, 1], [], []>} : vector<8x128xbf16>, vector<128x128xbf16>, vector<8x128xf32> -> vector<8x128xf32>
    %c0_13 = arith.constant 0 : index
    %c0_14 = arith.constant 0 : index
    %20 = vector.load %arg7[%c0_13, %c0_14] : memref<1x128xf32, #tpu.memory_space<vmem>>, vector<1x128xf32>
    %21 = vector.broadcast %20 : vector<1x128xf32> to vector<8x128xf32>
    %22 = arith.addf %19, %21 : vector<8x128xf32>
    %c0_15 = arith.constant 0 : index
    %c0_16 = arith.constant 0 : index
    %23 = vector.load %arg8[%c0_15, %c0_16] : memref<8x128xf32, #tpu.memory_space<vmem>>, vector<8x128xf32>
    tpu.vector_store %arg8[%c0_15, %c0_16], %22 {strides = array<i32>} : memref<8x128xf32, #tpu.memory_space<vmem>>, vector<8x128xf32>,
    return
  }
  func.func @transform_0(%arg0: i32) -> (i32, i32) {
    %c0_i32 = arith.constant 0 : i32
    %c0_i32_0 = arith.constant 0 : i32
    return %arg0, %c0_i32 : i32, i32
  }
  func.func @transform_1(%arg0: i32) -> (i32, i32) {
    %c0_i32 = arith.constant 0 : i32
    %c0_i32_0 = arith.constant 0 : i32
    return %arg0, %c0_i32 : i32, i32
  }
  func.func @transform_2(%arg0: i32) -> (i32, i32) {
    %c0_i32 = arith.constant 0 : i32
    %c0_i32_0 = arith.constant 0 : i32
    return %arg0, %c0_i32 : i32, i32
  }
  func.func @transform_3(%arg0: i32) -> (i32, i32) {
    %c0_i32 = arith.constant 0 : i32
    %c0_i32_0 = arith.constant 0 : i32
    return %arg0, %c0_i32 : i32, i32
  }
  func.func @transform_4(%arg0: i32) -> (i32, i32) {
    %c0_i32 = arith.constant 0 : i32
    %c0_i32_0 = arith.constant 0 : i32
    %c0_i32_1 = arith.constant 0 : i32
    return %c0_i32, %c0_i32_0 : i32, i32
  }
  func.func @transform_5(%arg0: i32) -> (i32, i32) {
    %c0_i32 = arith.constant 0 : i32
    %c0_i32_0 = arith.constant 0 : i32
    %c0_i32_1 = arith.constant 0 : i32
    return %c0_i32, %c0_i32_0 : i32, i32
  }
  func.func @transform_6(%arg0: i32) -> (i32, i32) {
    %c0_i32 = arith.constant 0 : i32
    %c0_i32_0 = arith.constant 0 : i32
    %c0_i32_1 = arith.constant 0 : i32
    return %c0_i32, %c0_i32_0 : i32, i32
  }
  func.func @transform_7(%arg0: i32) -> (i32, i32) {
    %c0_i32 = arith.constant 0 : i32
    %c0_i32_0 = arith.constant 0 : i32
    return %arg0, %c0_i32 : i32, i32
  }
}

</mosaic_0001>

<bundles_post_ra>
// kernel: _forward_impl.1
= control target key start
LH: loop header
LB: loop body
LE: loop exit
PB: predicated region body
PF: predicated region fallthrough
CT: control target
= control target key end

     0   :  { %v397_v1 = vmov 0   ;;  %v398_v2 = vmov 0.0   ;;  %v399_v5 = vmov 1   ;;  %vm400_vm0 = vmmov 0   ;;  %s508_s0 = inlined_call_operand.vmem [shape: f32[8,128], index: 0, kind: input, shape index: {}]   ;;  %s509_s1 = inlined_call_operand.vmem [shape: f32[8,128], index: 1, kind: input, shape index: {}]   ;;  %s510_s2 = inlined_call_operand.vmem [shape: f32[8,2], index: 2, kind: input, shape index: {}]   ;;  %s511_s3 = inlined_call_operand.vmem [shape: f32[8,128], index: 3, kind: input, shape index: {}]   ;;  %s512_s4 = inlined_call_operand.vmem [shape: bf16[128,128], index: 4, kind: input, shape index: {}]   ;;  %s513_s5 = inlined_call_operand.vmem [shape: bf16[128,128], index: 5, kind: input, shape index: {}]   ;;  %s514_s6 = inlined_call_operand.vmem [shape: f32[1,128], index: 6, kind: input, shape index: {}]   ;;  %s515_s7 = inlined_call_operand.hbm [shape: f32[8,128], index: 7, kind: output, shape index: {}]  }
   0x1   :  { %v28_v0 = vld [vmem:[%s510_s2] sm:$0xff]  ;;  %357 = vset.pattern.permute.xlu0 %v397_v1  ;;  %312 = vmatprep.subr.bf16.mxu0 %v398_v2  ;;  %v359_v3 = vld [vmem:[%s512_s4 + $0x38] sm:$0xff]   ;;  %v360_v4 = vld [vmem:[%s512_s4 + $0x30] sm:$0xff]  }
   0x2   :  { %32 = vperm.xlu0 %357, %v28_v0   ;;  %332 = vmatprep.subr.bf16.mxu1 %v398_v2  ;;  %v361_v6 = vld [vmem:[%s512_s4 + $0x28] sm:$0xff]   ;;  %v367_v7 = vld [vmem:[%s513_s5 + $0x38] sm:$0xff]   ;;  %v362_v8 = vld [vmem:[%s512_s4 + $0x20] sm:$0xff]  }
   0x3   :  { %313 = vmatpush3.bf16.msra.mxu0 %v359_v3  ;;  %328 = vmatprep.mubr.msk.bf16.mxu0 %vm400_vm0, %v398_v2  ;;  %v368_v9 = vld [vmem:[%s513_s5 + $0x30] sm:$0xff]   ;;  %v363_v10 = vld [vmem:[%s512_s4 + $0x18] sm:$0xff]   ;;  %v369_v11 = vld [vmem:[%s513_s5 + $0x28] sm:$0xff]  }
   0x4   :  { %314 = vmatprep.subr.bf16.mxu0 %v398_v2  ;;  %348 = vmatprep.mubr.msk.bf16.mxu1 %vm400_vm0, %v398_v2 }
   0x5   :  { %333 = vmatpush3.bf16.msra.mxu1 %v367_v7 }
   0x6   :  { %358 = vset.pattern.permute.xlu0 %v399_v5  ;;  %334 = vmatprep.subr.bf16.mxu1 %v398_v2 }
   0x7   :  { %38 = vperm.xlu0 %358, %v28_v0   ;;  %315 = vmatpush3.bf16.msra.mxu0 %v360_v4 }
   0x8   :  { %316 = vmatprep.subr.bf16.mxu0 %v398_v2 }
   0x9   :  { %335 = vmatpush3.bf16.msra.mxu1 %v368_v9 }
   0xa   :  { %336 = vmatprep.subr.bf16.mxu1 %v398_v2 }
   0xb   :  { %317 = vmatpush3.bf16.msra.mxu0 %v361_v6 }
   0xc   :  { %318 = vmatprep.subr.bf16.mxu0 %v398_v2 }
   0xf   :  { %319 = vmatpush3.bf16.msra.mxu0 %v362_v8 }
  0x10   :  { %320 = vmatprep.subr.bf16.mxu0 %v398_v2 }
  0x11   :  { %12 = vsyncpa [#allocation3], 0  ;;  %v364_v12 = vld [vmem:[%s512_s4 + $0x10] sm:$0xff]   ;;  %337 = vmatpush3.bf16.msra.mxu1 %v369_v11  ;;  %v370_v13 = vld [vmem:[%s513_s5 + $0x20] sm:$0xff]   ;;  %s401_s15 = smov [#allocation2]  }
  0x12   :  { %338 = vmatprep.subr.bf16.mxu1 %v398_v2  ;;  %v365_v14 = vld [vmem:[%s512_s4 + $0x8] sm:$0xff]   ;;  %v371_v15 = vld [vmem:[%s513_s5 + $0x18] sm:$0xff]   ;;  %v366_v16 = vld [vmem:[%s512_s4] sm:$0xff]   ;;  %s269_s16 = sshll.u32 %s401_s15, 4  ;;  %s270_s16 = int_to_ptr.vmem [resolvable:$true] %s269_s16 }
  0x13   :  { %321 = vmatpush3.bf16.msra.mxu0 %v363_v10  ;;  %v372_v17 = vld [vmem:[%s513_s5 + $0x10] sm:$0xff]   ;;  %v29_v19 = vld [vmem:[%s508_s0] sm:$0xff]  ;;  %v373_v26 = vld [vmem:[%s513_s5 + $0x8] sm:$0xff]   ;;  %p380_p1 = scmp.lt.s32.totalorder %s270_s16, %s270_s16 }
  0x14   :  { %322 = vmatprep.subr.bf16.mxu0 %v398_v2  ;;  %v36_v20 = vld [vmem:[%s509_s1] sm:$0xff] }
  0x15   :  { %339 = vmatpush3.bf16.msra.mxu1 %v370_v13  ;;  %v374_v27 = vld [vmem:[%s513_s5] sm:$0xff]  }
  0x16   :  { %340 = vmatprep.subr.bf16.mxu1 %v398_v2  ;;  %v60_v28 = vld [vmem:[%s511_s3] sm:$0xff]  ;;  %s375_s3 = scalar_lea.vmem %s270_s16, 128 }
  0x17   :  { %323 = vmatpush3.bf16.msra.mxu0 %v364_v12  ;;  %v285_v36 = vld [vmem:[%s514_s6] ss:$0 sm:$0xff]  ;;  %p376_p0 = scmp.ne.s32.totalorder %s270_s16, %s375_s3  ;;  %p381_p2 = scmp.lt.s32.totalorder %s375_s3, %s375_s3 }
  0x18   :  { %324 = vmatprep.subr.bf16.mxu0 %v398_v2 }
  0x19   :  { %341 = vmatpush3.bf16.msra.mxu1 %v371_v15  ;;  %p382_p3 = por %p381_p2, %p380_p1 }
  0x1a   :  { %342 = vmatprep.subr.bf16.mxu1 %v398_v2 }
  0x1b   :  { %325 = vmatpush3.bf16.msra.mxu0 %v365_v14  ;;  %p383_p4 = pnand %p382_p3, %p376_p0 }
  0x1c   :  { %326 = vmatprep.subr.bf16.mxu0 %v398_v2 }
  0x1d   :  { %343 = vmatpush3.bf16.msra.mxu1 %v372_v17 }
  0x1e   :  { %344 = vmatprep.subr.bf16.mxu1 %v398_v2 }
  0x1f   :  { %327 = vmatpush3.bf16.msra.mxu0 %v366_v16 }
  0x21   :  { %345 = vmatpush3.bf16.msra.mxu1 %v373_v26 }
  0x22   :  { %346 = vmatprep.subr.bf16.mxu1 %v398_v2 }
  0x25   :  { %347 = vmatpush3.bf16.msra.mxu1 %v374_v27 }
  0x7d   :  { %v33_v18 = vpop.permute.xlu0 %32 }
  0x7e   :  { %v35_v22 = vmul.f32 %v33_v18, %v29_v19 }
  0x82   :  { %v39_v21 = vpop.permute.xlu0 %38 }
  0x83   :  { %v41_v23 = vmul.f32 %v39_v21, %v36_v20 }
  0x85   :  { %v42_v24 = vadd.f32 %v41_v23, %v35_v22 }
  0x87   :  { %v43_v25 = vpack.c.bf16 %v42_v24, %v42_v24 }
  0x89   :  { %329 = vmatmul.mubr.bf16.vlgmr.msra.gmra.mxu0 %v43_v25 }
 0x149   :  { %v143_v29 = vpop.f32.mrf.mxu0 }
 0x14a   :  { %v144_v30 = vadd.f32 %v143_v29, %v60_v28 }
 0x14b   :  { %v330_v31 = vpop.f32.mrf.mxu0 }
 0x14c   :  { %v149_v32 = vmax.f32 %v144_v30, 0.0 }
 0x14d   :  { %v146_v33 = vpop.f32.mrf.mxu0 }
 0x14e   :  { %v150_v34 = vpack.c.bf16 %v149_v32, %v149_v32 }
 0x14f   :  { %v331_v35 = vpop.f32.mrf.mxu0 }
 0x150   :  { %349 = vmatmul.mubr.bf16.vlgmr.msra.gmra.mxu1 %v150_v34 }
 0x210   :  { %v256_v37 = vpop.f32.mrf.mxu1 }
 0x211   :  { %v257_v38 = vadd.f32 %v285_v36, %v256_v37 }
 0x212   :  { %v350_v39 = vpop.f32.mrf.mxu1 }
 0x213   :  { %262 = vst [vmem:[#allocation2] sm:$0xff] %v257_v38 }
 0x214   :  { %v259_v40 = vpop.f32.mrf.mxu1 }
 0x215   :  { %386 = shalt.err (!%p383_p4)
}
 0x216   :  { %272 = dma.vmem_to_hbm [thread:$0]  %s270_s16, 128, %s515_s7, [#allocation3]   ;;  %v351_v41 = vpop.f32.mrf.mxu1 }
 0x217   :  { %395 = dma.done.wait [#allocation3], 128  }
 0x218   :  { %396 = vsyncadd [#allocation3], 4294967168 }
 0x219   :  { %276 = vsyncpa [#allocation3], 1 }

</bundles_post_ra>
